<compile_context>
chip_gen: v7x
topology: tpu7x:2x2x1
jax: 0.10.0
libtpu: 0.0.40
codegen_flags: <defaults>
</compile_context>

<pallas_src>
import functools

import jax
import jax.numpy as jnp
from jax.experimental import pallas as pl
from jax.experimental.pallas import tpu as pltpu


def _circle_tuning_kernel(x_ref, v_ref, out_ref, acc_ref, *, state_max):
    # x_ref: (D, tile_n) lane-dense block;  v_ref: (1, tile_n)
    k = pl.program_id(1)

    @pl.when(k == 0)
    def _():
        acc_ref[...] = jnp.zeros_like(acc_ref)

    x = x_ref[...].astype(jnp.float32)          # explicit f32 (v5e has no bf16 VPU)
    v = v_ref[...].astype(jnp.float32)

    # sum of squares over the (tiny) state dim D -> (1, tile_n); sublane reduce
    ss = jnp.sum(x * x, axis=0, keepdims=True)
    diff = jnp.sqrt(ss) - jnp.float32(state_max) * v
    # per-lane partial sums: one full-width VPU FMA-equivalent per step
    acc_ref[...] += diff * diff

    @pl.when(k == pl.num_programs(1) - 1)
    def _():
        # single cross-lane reduce per split; tuning_factor/N applied in wrapper
        out_ref[0, 0] = jnp.sum(acc_ref[...])


def circle_tuning_loss(x, v_candidate, state_max, tuning_factor=0.1, *,
                       tile_n=4096, n_splits=2):
    """x: (N, D), v_candidate: (N, 1). Returns scalar f32 loss."""
    n, d = x.shape
    assert v_candidate.shape == (n, 1)

    # lane-dense layout: batch along lanes (layout plumbing stays in the wrapper)
    xt = jnp.transpose(x)                            # (D, N)
    vt = jnp.transpose(v_candidate)                  # (1, N)

    # tile sizing: multiple of 128 lanes; shrink to a single tile for tiny N
    n_rounded = ((n + 127) // 128) * 128
    tile_n = max(128, min(int(tile_n), n_rounded))
    tile_n = ((tile_n + 127) // 128) * 128

    num_tiles = pl.cdiv(n, tile_n)
    n_splits = max(1, min(int(n_splits), num_tiles))
    tiles_per_split = pl.cdiv(num_tiles, n_splits)
    n_pad = n_splits * tiles_per_split * tile_n

    if n_pad != n:
        # zero-pad: padded columns -> l2 = 0 and v = 0 -> diff = 0 -> no contribution
        xt = jnp.pad(xt, ((0, 0), (0, n_pad - n)))
        vt = jnp.pad(vt, ((0, 0), (0, n_pad - n)))

    kernel = functools.partial(_circle_tuning_kernel, state_max=float(state_max))

    partials = pl.pallas_call(
        kernel,
        out_shape=jax.ShapeDtypeStruct((n_splits, 1), jnp.float32),
        grid_spec=pltpu.PrefetchScalarGridSpec(
            num_scalar_prefetch=0,
            grid=(n_splits, tiles_per_split),
            in_specs=[
                pl.BlockSpec((d, tile_n),
                             lambda s, k: (0, s * tiles_per_split + k)),
                pl.BlockSpec((1, tile_n),
                             lambda s, k: (0, s * tiles_per_split + k)),
            ],
            out_specs=pl.BlockSpec((1, 1), lambda s, k: (s, 0),
                                   memory_space=pltpu.SMEM),
            scratch_shapes=[pltpu.VMEM((1, tile_n), jnp.float32)],
        ),
        compiler_params=pltpu.CompilerParams(
            dimension_semantics=("parallel", "arbitrary"),
        ),
    )(xt, vt)

    # constants hoisted out of the hot loop: mean(c * y) = c * mean(y)
    return jnp.sum(partials) * (jnp.float32(tuning_factor) / jnp.float32(n))


def _reference(x, v_candidate, state_max, tuning_factor):
    l2 = jnp.sqrt(jnp.sum(x.astype(jnp.float32) ** 2, axis=1, keepdims=True))
    diff = l2 - state_max * v_candidate.astype(jnp.float32)
    return jnp.mean(tuning_factor * diff ** 2)


if __name__ == "__main__":
    key = jax.random.PRNGKey(0)
    state_max = 2.5
    tuning_factor = 0.1

    k1, k2, k3, k4 = jax.random.split(key, 4)

    # small case matching the module's typical usage (batch of low-dim states)
    N, D = 16, 4
    x_small = jax.random.normal(k1, (N, D), dtype=jnp.float32)
    v_small = jax.random.uniform(k2, (N, 1), dtype=jnp.float32)

    loss_small = jax.block_until_ready(
        circle_tuning_loss(x_small, v_small, state_max, tuning_factor))
    ref_small = _reference(x_small, v_small, state_max, tuning_factor)
    assert jnp.allclose(loss_small, ref_small, rtol=1e-5, atol=1e-6), (
        loss_small, ref_small)

    # ragged / multi-tile / multi-split path (exercises padding + parallel axis)
    N2, D2 = 3000, 4
    x_big = jax.random.normal(k3, (N2, D2), dtype=jnp.float32)
    v_big = jax.random.uniform(k4, (N2, 1), dtype=jnp.float32)

    loss_big = jax.block_until_ready(
        circle_tuning_loss(x_big, v_big, state_max, tuning_factor, tile_n=512))
    ref_big = _reference(x_big, v_big, state_max, tuning_factor)
    assert jnp.allclose(loss_big, ref_big, rtol=1e-5, atol=1e-6), (
        loss_big, ref_big)

    print("KERNEL_OK")
</pallas_src>

<mosaic_0001>
module attributes {stable_mosaic.version = 11 : i64} {
  func.func @_circle_tuning_kernel(%arg0: i32, %arg1: i32, %arg2: memref<4x128xf32, #tpu.memory_space<vmem>>, %arg3: memref<1x128xf32, #tpu.memory_space<vmem>>, %arg4: memref<1x1xf32, #tpu.memory_space<smem>>, %arg5: memref<1x128xf32, #tpu.memory_space<vmem>>) attributes {dimension_semantics = [#tpu.dimension_semantics<parallel>, #tpu.dimension_semantics<arbitrary>], iteration_bounds = array<i64: 1, 1>, scalar_prefetch = 0 : i64, scratch_operands = 1 : i64, tpu.core_type = #tpu.core_type<tc>, window_params = [{transform_indices = @transform_0, window_bounds = array<i64: 4, 128>}, {transform_indices = @transform_1, window_bounds = array<i64: 1, 128>}, {transform_indices = @transform_2, window_bounds = array<i64: 1, 1>}]} {
    %c0_i32 = arith.constant 0 : i32
    %0 = arith.cmpi eq, %arg1, %c0_i32 : i32
    %1 = arith.extui %0 : i1 to i32
    %c0_i32_0 = arith.constant 0 : i32
    %2 = arith.cmpi ne, %1, %c0_i32_0 : i32
    scf.if %2 {
      %cst_11 = arith.constant 0.000000e+00 : f32
      %19 = vector.broadcast %cst_11 : f32 to vector<1x128xf32>
      %c0_12 = arith.constant 0 : index
      %c0_13 = arith.constant 0 : index
      %20 = vector.load %arg5[%c0_12, %c0_13] : memref<1x128xf32, #tpu.memory_space<vmem>>, vector<1x128xf32>
      tpu.vector_store %arg5[%c0_12, %c0_13], %19 {strides = array<i32>} : memref<1x128xf32, #tpu.memory_space<vmem>>, vector<1x128xf32>,
    } else {
    }
    %c0 = arith.constant 0 : index
    %c0_1 = arith.constant 0 : index
    %3 = vector.load %arg2[%c0, %c0_1] : memref<4x128xf32, #tpu.memory_space<vmem>>, vector<4x128xf32>
    %c0_2 = arith.constant 0 : index
    %c0_3 = arith.constant 0 : index
    %4 = vector.load %arg3[%c0_2, %c0_3] : memref<1x128xf32, #tpu.memory_space<vmem>>, vector<1x128xf32>
    %5 = arith.mulf %3, %3 : vector<4x128xf32>
    %cst = arith.constant dense<0.000000e+00> : vector<128xf32>
    %6 = vector.multi_reduction <add>, %5, %cst [0] : vector<4x128xf32> to vector<128xf32>
    %7 = vector.shape_cast %6 : vector<128xf32> to vector<1x128xf32>
    %8 = math.sqrt %7 : vector<1x128xf32>
    %cst_4 = arith.constant 2.500000e+00 : f32
    %9 = vector.broadcast %cst_4 : f32 to vector<1x128xf32>
    %10 = arith.mulf %9, %4 : vector<1x128xf32>
    %11 = arith.subf %8, %10 : vector<1x128xf32>
    %c0_5 = arith.constant 0 : index
    %c0_6 = arith.constant 0 : index
    %12 = vector.load %arg5[%c0_5, %c0_6] : memref<1x128xf32, #tpu.memory_space<vmem>>, vector<1x128xf32>
    %13 = arith.mulf %11, %11 : vector<1x128xf32>
    %14 = arith.addf %12, %13 : vector<1x128xf32>
    %c0_7 = arith.constant 0 : index
    %c0_8 = arith.constant 0 : index
    %15 = vector.load %arg5[%c0_7, %c0_8] : memref<1x128xf32, #tpu.memory_space<vmem>>, vector<1x128xf32>
    tpu.vector_store %arg5[%c0_7, %c0_8], %14 {strides = array<i32>} : memref<1x128xf32, #tpu.memory_space<vmem>>, vector<1x128xf32>,
    %c0_i32_9 = arith.constant 0 : i32
    %16 = arith.cmpi eq, %arg1, %c0_i32_9 : i32
    %17 = arith.extui %16 : i1 to i32
    %c0_i32_10 = arith.constant 0 : i32
    %18 = arith.cmpi ne, %17, %c0_i32_10 : i32
    scf.if %18 {
      %c0_11 = arith.constant 0 : index
      %c0_12 = arith.constant 0 : index
      %19 = vector.load %arg5[%c0_11, %c0_12] : memref<1x128xf32, #tpu.memory_space<vmem>>, vector<1x128xf32>
      %20 = vector.shape_cast %19 : vector<1x128xf32> to vector<1x1x128xf32>
      %cst_13 = arith.constant dense<0.000000e+00> : vector<1xf32>
      %21 = vector.multi_reduction <add>, %20, %cst_13 [1, 2] : vector<1x1x128xf32> to vector<1xf32>
      %22 = vector.shape_cast %21 : vector<1xf32> to vector<1x1x1xf32>
      %23 = vector.extract %22[0, 0, 0] : f32 from vector<1x1x1xf32>
      %c0_14 = arith.constant 0 : index
      %c0_15 = arith.constant 0 : index
      %24 = memref.load %arg4[%c0_14, %c0_15] : memref<1x1xf32, #tpu.memory_space<smem>>
      memref.store %23, %arg4[%c0_14, %c0_15] : memref<1x1xf32, #tpu.memory_space<smem>>
    } else {
    }
    return
  }
  func.func @transform_0(%arg0: i32, %arg1: i32) -> (i32, i32) {
    %c1_i32 = arith.constant 1 : i32
    %0 = arith.muli %arg0, %c1_i32 : i32
    %1 = arith.addi %0, %arg1 : i32
    %c0_i32 = arith.constant 0 : i32
    %c0_i32_0 = arith.constant 0 : i32
    return %c0_i32, %1 : i32, i32
  }
  func.func @transform_1(%arg0: i32, %arg1: i32) -> (i32, i32) {
    %c1_i32 = arith.constant 1 : i32
    %0 = arith.muli %arg0, %c1_i32 : i32
    %1 = arith.addi %0, %arg1 : i32
    %c0_i32 = arith.constant 0 : i32
    %c0_i32_0 = arith.constant 0 : i32
    return %c0_i32, %1 : i32, i32
  }
  func.func @transform_2(%arg0: i32, %arg1: i32) -> (i32, i32) {
    %c0_i32 = arith.constant 0 : i32
    %c0_i32_0 = arith.constant 0 : i32
    return %arg0, %c0_i32 : i32, i32
  }
}

</mosaic_0001>

<bundles_post_ra>
// kernel: tpu_custom_call.1
= control target key start
LH: loop header
LB: loop body
LE: loop exit
PB: predicated region body
PF: predicated region fallthrough
CT: control target
= control target key end

     0   :  { %7 = vsyncpa [#allocation4], 0  ;;  %s193_s0 = inlined_call_operand.hbm [shape: f32[4,128], index: 0, kind: input, shape index: {}]   ;;  %s194_s1 = inlined_call_operand.vmem [shape: f32[1,128], index: 1, kind: input, shape index: {}]   ;;  %s195_s2 = inlined_call_operand.hbm [shape: f32[1,1], index: 2, kind: output, shape index: {}]  }
   0x1   :  { %8 = vsyncpa [#allocation5], 0  ;;  %s148_s9 = smov [#allocation3]   ;;  %s112_s13 = scalar_lea.hbm %s193_s0, 64 }
   0x2   :  { %s18_s10 = sshll.u32 %s148_s9, 4  ;;  %p113_p0 = scmp.ne.s32.totalorder %s193_s0, %s112_s13  ;;  %s19_s10 = int_to_ptr.vmem [resolvable:$true] %s18_s10 }
   0x3   :  { %p116_p1 = scmp.lt.u32.totalorder %s112_s13, %s193_s0 }
   0x5   :  { %p118_p2 = pnand %p116_p1, %p113_p0 }
   0x7   :  { %121 = shalt.err (!%p118_p2)
}
   0x8   :  { %s122_s18 = scalar_lea.vmem %s19_s10, 64  ;;  %p127_p4 = scmp.lt.s32.totalorder %s19_s10, %s19_s10 }
   0x9   :  { %p123_p3 = scmp.ne.s32.totalorder %s19_s10, %s122_s18  ;;  %p128_p5 = scmp.lt.s32.totalorder %s122_s18, %s122_s18 }
   0xb   :  { %p129_p6 = por %p128_p5, %p127_p4 }
   0xd   :  { %p130_p7 = pnand %p129_p6, %p123_p3 }
   0xf   :  { %133 = shalt.err (!%p130_p7)
}
  0x10   :  { %21 = dma.hbm_to_vmem [thread:$0]  %s193_s0, 64, %s19_s10, [#allocation4]  }
  0x11   :  { %144 = dma.done.wait [#allocation4], 64  }
  0x12   :  { %145 = vsyncadd [#allocation4], 4294967232  ;;  %v149_v0 = vmov 0.0   ;;  %v47_v1 = vld [vmem:[#allocation3] sm:$0xf]  ;;  %vm50_vm0 = vcmask 1043456  }
  0x13   :  { %46 = vst [vmem:[#allocation2] sm:$0x1] %v149_v0  ;;  %v49_v2 = vmul.f32 %v47_v1, %v47_v1  ;;  %v48_v10 = vld [vmem:[%s194_s1] sm:$0x1]  ;;  %vm75_vm3 = vcmask 1040384   ;;  %s134_s24 = scalar_lea.hbm %s195_s2, 16 }
  0x14   :  { %v65_v14 = vmul.f32 2.5, %v48_v10  ;;  %p135_p8 = scmp.ne.s32.totalorder %s195_s2, %s134_s24  ;;  %p138_p9 = scmp.lt.u32.totalorder %s134_s24, %s195_s2 }
  0x15   :  { %v51_v3 = vsel %vm50_vm0, %v49_v2, 0.0 }
  0x16   :  { %v52_v4 = vrot.slane %v51_v3, 4  ;;  %p140_p10 = pnand %p138_p9, %p135_p8 }
  0x18   :  { %v53_v5 = vadd.f32 %v52_v4, %v51_v3 }
  0x1a   :  { %v54_v6 = vrot.slane %v53_v5, 2  ;;  %v67_v18 = vld [vmem:[#allocation2] sm:$0x1] }
  0x1c   :  { %v55_v7 = vadd.f32 %v54_v6, %v53_v5 }
  0x1e   :  { %v56_v8 = vrot.slane %v55_v7, 1 }
  0x20   :  { %v57_v9 = vadd.f32 %v56_v8, %v55_v7 }
  0x22   :  { %110 = vrsqrt.f32 %v57_v9  ;;  %vm60_vm1 = vcmp.eq.f32.partialorder %v57_v9, inf  ;;  %v63_v12 = vand.u32 2147483648, %v57_v9  ;;  %vm62_vm2 = vcmp.eq.f32.partialorder %v57_v9, 0.0 }
  0x2c   :  { %v111_v11 = vpop.eup %110 }
  0x2d   :  { %v59_v13 = vmul.f32 %v111_v11, %v57_v9 }
  0x2f   :  { %v61_v15 = vsel %vm60_vm1, %v57_v9, %v59_v13 }
  0x30   :  { %v64_v16 = vsel %vm62_vm2, %v63_v12, %v61_v15 }
  0x31   :  { %v66_v17 = vsub.f32 %v64_v16, %v65_v14 }
  0x33   :  { %v68_v19 = vmul.f32 %v66_v17, %v66_v17 }
  0x35   :  { %v69_v20 = vadd.f32 %v68_v19, %v67_v18 }
  0x37   :  { %70 = vst [vmem:[#allocation2] sm:$0x1] %v69_v20 }
  0x3e   :  { %v74_v21 = vld [vmem:[#allocation2] sm:$0x1] }
  0x3f   :  { %v76_v22 = vsel %vm75_vm3, %v74_v21, 0.0 }
  0x40   :  { %77 = vadd.xlane.f32.xlu0 %v76_v22 }
  0xcd   :  { %v78_v23 = vpop.xlane.xlu0 %77 }
  0xce   :  { %v79_v24 = vrot.slane %v78_v23, 4 }
  0xd0   :  { %v80_v25 = vadd.f32 %v79_v24, %v78_v23 }
  0xd2   :  { %v81_v26 = vrot.slane %v80_v25, 2 }
  0xd4   :  { %v82_v27 = vadd.f32 %v81_v26, %v80_v25 }
  0xd6   :  { %v83_v28 = vrot.slane %v82_v27, 1 }
  0xd8   :  { %v84_v29 = vadd.f32 %v83_v28, %v82_v27 }
  0xda   :  { %105 = vpush %v84_v29 }
 0x10b   :  { %s106_s0 = spop %105 }
 0x10c   :  { %87 = sst [smem:[#allocation6]] %s106_s0 }
 0x10d   :  { %143 = shalt.err (!%p140_p10)
}
 0x10e   :  { %s150_s29 = smov [#allocation6]  }
 0x10f   :  { %95 = dma.smem_to_hbm %s150_s29, 16, %s195_s2, [#allocation5]  }
 0x110   :  { %146 = dma.done.wait [#allocation5], 16  }
 0x111   :  { %147 = vsyncadd [#allocation5], 4294967280 }
 0x112   :  { %99 = sfence }
 0x113   :  { %100 = vsyncpa [#allocation4], 1 }
 0x114   :  { %101 = vsyncpa [#allocation5], 1 }

</bundles_post_ra>
